<compile_context>
chip_gen: v7x
topology: tpu7x:2x2x1
jax: 0.10.0
libtpu: 0.0.40
codegen_flags: <defaults>
</compile_context>

<pallas_src>
import functools

import jax
import jax.numpy as jnp
from jax.experimental import pallas as pl
from jax.experimental.pallas import tpu as pltpu

EPS = 1e-5


def block_kernel(x_ref, w1_ref, w2_ref, wsc_ref,
                 g1_ref, b1_ref, g2_ref, b2_ref, gsc_ref, bsc_ref,
                 out_ref, *, seq_len):
    """Residual Conv1d block in channel-major (C, N*L) layout.

    x_ref   : (Cin,  N*L)    f32   activations; lane axis = flattened (batch, length)
    w1_ref  : (Cmid, 3*Cin)  bf16  conv1 weights, im2col-folded taps (k-major, c-minor)
    w2_ref  : (Cout, 3*Cmid) bf16  conv2 weights, im2col-folded
    wsc_ref : (Cout, Cin)    bf16  1x1 shortcut conv weights
    g*/b*   : (C, 1)         f32   BatchNorm affine params (column vectors)
    out_ref : (Cout, N*L)    f32   lane-dense output slab
    """
    _, NL = x_ref.shape
    inv_count = 1.0 / float(NL)

    # Per-sample boundary masks along the flattened lane axis (built once, hoisted).
    col = jax.lax.broadcasted_iota(jnp.int32, (1, NL), 1) % seq_len
    is_first = col == 0
    is_last = col == seq_len - 1

    def im2col_taps(a):
        # a: (C, N*L) f32. Build the k=3, pad=1 taps via lane rotation (XLU slot) plus
        # boundary masking; the rotation wraps across sample boundaries and the masks
        # zero exactly those positions (equivalent to zero-padding each sample by 1).
        left = jnp.where(is_first, 0.0, pltpu.roll(a, 1, 1))        # value at l-1
        right = jnp.where(is_last, 0.0, pltpu.roll(a, NL - 1, 1))   # value at l+1
        return jnp.concatenate([left, a, right], axis=0)            # (3*C, N*L)

    def batchnorm_coeffs(h, g_ref, b_ref):
        # Training-mode BN: batch statistics over (N, L) per channel, biased variance.
        mean = jnp.sum(h, axis=1, keepdims=True) * inv_count
        var = jnp.sum((h - mean) ** 2, axis=1, keepdims=True) * inv_count
        scale = g_ref[...] * jax.lax.rsqrt(var + EPS)
        shift = b_ref[...] - mean * scale
        return scale, shift

    x = x_ref[...]                                                   # (Cin, N*L) f32

    # ---- conv1 (k=3, pad=1, no bias): one MXU matmul, bf16 operands, f32 accumulate ----
    h1 = jnp.dot(w1_ref[...], im2col_taps(x).astype(jnp.bfloat16),
                 preferred_element_type=jnp.float32)                 # (Cmid, N*L)
    s1, t1 = batchnorm_coeffs(h1, g1_ref, b1_ref)
    a1 = jnp.maximum(h1 * s1 + t1, 0.0)                              # bn1 + relu1 (f32)

    # ---- conv2 (k=3, pad=1, no bias) ----
    h2 = jnp.dot(w2_ref[...], im2col_taps(a1).astype(jnp.bfloat16),
                 preferred_element_type=jnp.float32)                 # (Cout, N*L)
    s2, t2 = batchnorm_coeffs(h2, g2_ref, b2_ref)

    # ---- shortcut: 1x1 conv + bn ----
    sc = jnp.dot(wsc_ref[...], x.astype(jnp.bfloat16),
                 preferred_element_type=jnp.float32)                 # (Cout, N*L)
    ss, ts = batchnorm_coeffs(sc, gsc_ref, bsc_ref)

    # ---- residual add + relu2 (single fused epilogue, lane-dense store) ----
    out_ref[...] = jnp.maximum((h2 * s2 + t2) + (sc * ss + ts), 0.0).astype(out_ref.dtype)


@jax.jit
def block_forward(x_ncl, params):
    """x_ncl: (N, C_in, L) in PyTorch NCL layout. Returns (N, C_out, L)."""
    w1, w2, wsc, g1, b1, g2, b2, gsc, bsc = params
    N, Cin, L = x_ncl.shape
    Cmid = w1.shape[0]
    Cout = w2.shape[0]

    # Channel-major with batch folded into the lane axis: (Cin, N*L).
    # TODO(synk): fold this NCL -> (C, N*L) transpose into the kernel / BlockSpec so the
    # input is not round-tripped through HBM once more for very large tensors.
    x_cm = jnp.transpose(x_ncl.astype(jnp.float32), (1, 0, 2)).reshape(Cin, N * L)

    # im2col-folded weights (row = out channel, col = k*C_in + c), bf16 for the MXU.
    w1_f = jnp.transpose(w1, (0, 2, 1)).reshape(Cmid, 3 * Cin).astype(jnp.bfloat16)
    w2_f = jnp.transpose(w2, (0, 2, 1)).reshape(Cout, 3 * Cmid).astype(jnp.bfloat16)
    wsc_f = wsc[:, :, 0].astype(jnp.bfloat16)

    as_col = lambda v: v.reshape(-1, 1).astype(jnp.float32)

    vmem = pl.BlockSpec(memory_space=pltpu.MemorySpace.VMEM)
    # TODO(synk): for shapes where the (C, N*L) slabs exceed VMEM (esp. v7x's 64 MiB),
    # tile the lane axis with a grid and a two-pass BN (cross-tile sum/sumsq accumulation)
    # so the batch statistics stay global; at these sizes a single resident pass is optimal.
    out_cm = pl.pallas_call(
        functools.partial(block_kernel, seq_len=L),
        out_shape=jax.ShapeDtypeStruct((Cout, N * L), jnp.float32),
        in_specs=[vmem] * 10,
        out_specs=vmem,
    )(x_cm, w1_f, w2_f, wsc_f,
      as_col(g1), as_col(b1), as_col(g2), as_col(b2), as_col(gsc), as_col(bsc))

    # (Cout, N*L) -> (N, Cout, L) NCL
    return jnp.transpose(out_cm.reshape(Cout, N, L), (1, 0, 2))


# ---------------- pure-JAX reference (mirrors the PyTorch forward) ----------------
def reference_forward(x_ncl, params):
    w1, w2, wsc, g1, b1, g2, b2, gsc, bsc = params

    def conv1d(x, w, pad):
        return jax.lax.conv_general_dilated(
            x, w, window_strides=(1,), padding=[(pad, pad)],
            dimension_numbers=("NCH", "OIH", "NCH"))

    def bn(x, g, b):
        mean = jnp.mean(x, axis=(0, 2), keepdims=True)
        var = jnp.mean((x - mean) ** 2, axis=(0, 2), keepdims=True)
        return (x - mean) * jax.lax.rsqrt(var + EPS) * g[None, :, None] + b[None, :, None]

    h = jax.nn.relu(bn(conv1d(x_ncl, w1, 1), g1, b1))
    h = bn(conv1d(h, w2, 1), g2, b2)
    s = bn(conv1d(x_ncl, wsc, 0), gsc, bsc)
    return jax.nn.relu(h + s)


if __name__ == "__main__":
    # Block(in_channels=4, out_channels=8) -> inner_channels = 4
    N, Cin, L = 2, 4, 16
    Cout = 8
    Cmid = Cout // 2

    key = jax.random.PRNGKey(0)
    ks = jax.random.split(key, 8)
    w1 = 0.2 * jax.random.normal(ks[0], (Cmid, Cin, 3), jnp.float32)
    w2 = 0.2 * jax.random.normal(ks[1], (Cout, Cmid, 3), jnp.float32)
    wsc = 0.2 * jax.random.normal(ks[2], (Cout, Cin, 1), jnp.float32)
    g1 = 0.5 + jax.random.uniform(ks[3], (Cmid,), jnp.float32)
    b1 = 0.1 * jax.random.normal(ks[4], (Cmid,), jnp.float32)
    g2 = 0.5 + jax.random.uniform(ks[5], (Cout,), jnp.float32)
    b2 = 0.1 * jax.random.normal(ks[6], (Cout,), jnp.float32)
    gsc = jnp.ones((Cout,), jnp.float32)
    bsc = jnp.zeros((Cout,), jnp.float32)
    params = (w1, w2, wsc, g1, b1, g2, b2, gsc, bsc)

    x = jax.random.normal(jax.random.PRNGKey(42), (N, Cin, L), jnp.float32)

    y = block_forward(x, params)
    y = jax.block_until_ready(y)

    y_ref = reference_forward(x, params)
    assert y.shape == (N, Cout, L)
    # Tolerance accounts for bf16 MXU operands (f32 accumulation / f32 BN math).
    assert jnp.allclose(y, y_ref, atol=5e-2, rtol=5e-2), \
        f"max abs diff {jnp.max(jnp.abs(y - y_ref))}"

    print("KERNEL_OK")
</pallas_src>

<mosaic_0001>
module attributes {stable_mosaic.version = 11 : i64} {
  func.func @block_kernel(%arg0: memref<4x32xf32, #tpu.memory_space<vmem>>, %arg1: memref<4x12xbf16, #tpu.memory_space<vmem>>, %arg2: memref<8x12xbf16, #tpu.memory_space<vmem>>, %arg3: memref<8x4xbf16, #tpu.memory_space<vmem>>, %arg4: memref<4x1xf32, #tpu.memory_space<vmem>>, %arg5: memref<4x1xf32, #tpu.memory_space<vmem>>, %arg6: memref<8x1xf32, #tpu.memory_space<vmem>>, %arg7: memref<8x1xf32, #tpu.memory_space<vmem>>, %arg8: memref<8x1xf32, #tpu.memory_space<vmem>>, %arg9: memref<8x1xf32, #tpu.memory_space<vmem>>, %arg10: memref<8x32xf32, #tpu.memory_space<vmem>>) attributes {dimension_semantics = [], scalar_prefetch = 0 : i64, scratch_operands = 0 : i64, tpu.core_type = #tpu.core_type<tc>} {
    %0 = tpu.iota {dimensions = array<i32: 1>} : vector<1x32xi32>
    %c16_i32 = arith.constant 16 : i32
    %c0_i32 = arith.constant 0 : i32
    %1 = arith.cmpi eq, %c16_i32, %c0_i32 : i32
    %c1_i32 = arith.constant 1 : i32
    %2 = arith.select %1, %c1_i32, %c16_i32 : i32
    %3 = vector.broadcast %2 : i32 to vector<1x32xi32>
    %4 = arith.remsi %0, %3 : vector<1x32xi32>
    %c0_i32_0 = arith.constant 0 : i32
    %5 = vector.broadcast %c0_i32_0 : i32 to vector<1x32xi32>
    %6 = arith.cmpi ne, %4, %5 : vector<1x32xi32>
    %c0_i32_1 = arith.constant 0 : i32
    %7 = vector.broadcast %c0_i32_1 : i32 to vector<1x32xi32>
    %8 = arith.cmpi slt, %4, %7 : vector<1x32xi32>
    %c0_i32_2 = arith.constant 0 : i32
    %9 = arith.cmpi slt, %2, %c0_i32_2 : i32
    %10 = vector.broadcast %9 : i1 to vector<1x32xi1>
    %11 = vector.broadcast %10 : vector<1x32xi1> to vector<1x32xi1>
    %12 = arith.xori %8, %11 : vector<1x32xi1>
    %13 = arith.andi %12, %6 : vector<1x32xi1>
    %14 = vector.broadcast %2 : i32 to vector<1x32xi32>
    %15 = arith.addi %4, %14 : vector<1x32xi32>
    %16 = arith.select %13, %15, %4 : vector<1x32xi1>, vector<1x32xi32>
    %c0_i32_3 = arith.constant 0 : i32
    %17 = vector.broadcast %c0_i32_3 : i32 to vector<1x32xi32>
    %18 = arith.cmpi eq, %16, %17 : vector<1x32xi32>
    %c15_i32 = arith.constant 15 : i32
    %19 = vector.broadcast %c15_i32 : i32 to vector<1x32xi32>
    %20 = arith.cmpi eq, %16, %19 : vector<1x32xi32>
    %c0 = arith.constant 0 : index
    %c0_4 = arith.constant 0 : index
    %21 = vector.load %arg0[%c0, %c0_4] : memref<4x32xf32, #tpu.memory_space<vmem>>, vector<4x32xf32>
    %c0_5 = arith.constant 0 : index
    %c0_6 = arith.constant 0 : index
    %22 = vector.load %arg1[%c0_5, %c0_6] : memref<4x12xbf16, #tpu.memory_space<vmem>>, vector<4x12xbf16>
    %c1_i32_7 = arith.constant 1 : i32
    %23 = tpu.dynamic_rotate %21 by %c1_i32_7 dim 1 : vector<4x32xf32>, i32 -> vector<4x32xf32>
    %cst = arith.constant 0.000000e+00 : f32
    %24 = vector.shape_cast %18 : vector<1x32xi1> to vector<1x32xi1>
    %25 = vector.broadcast %24 : vector<1x32xi1> to vector<4x32xi1>
    %26 = vector.broadcast %cst : f32 to vector<4x32xf32>
    %27 = arith.select %25, %26, %23 : vector<4x32xi1>, vector<4x32xf32>
    %c31_i32 = arith.constant 31 : i32
    %28 = tpu.dynamic_rotate %21 by %c31_i32 dim 1 : vector<4x32xf32>, i32 -> vector<4x32xf32>
    %cst_8 = arith.constant 0.000000e+00 : f32
    %29 = vector.shape_cast %20 : vector<1x32xi1> to vector<1x32xi1>
    %30 = vector.broadcast %29 : vector<1x32xi1> to vector<4x32xi1>
    %31 = vector.broadcast %cst_8 : f32 to vector<4x32xf32>
    %32 = arith.select %30, %31, %28 : vector<4x32xi1>, vector<4x32xf32>
    %33 = tpu.concatenate %27, %21, %32 in 0 : vector<4x32xf32>, vector<4x32xf32>, vector<4x32xf32> -> vector<12x32xf32>
    %34 = arith.truncf %33 : vector<12x32xf32> to vector<12x32xbf16>
    %cst_9 = arith.constant dense<0.000000e+00> : vector<4x32xf32>
    %35 = tpu.matmul %22, %34, %cst_9 {dimension_numbers = #tpu.dot_dimension_numbers<[1], [0], [0], [1], [0, 0, 1, 1], [], []>} : vector<4x12xbf16>, vector<12x32xbf16>, vector<4x32xf32> -> vector<4x32xf32>
    %cst_10 = arith.constant dense<0.000000e+00> : vector<4xf32>
    %36 = vector.multi_reduction <add>, %35, %cst_10 [1] : vector<4x32xf32> to vector<4xf32>
    %37 = vector.shape_cast %36 : vector<4xf32> to vector<4x1xf32>
    %cst_11 = arith.constant 3.125000e-02 : f32
    %38 = vector.broadcast %cst_11 : f32 to vector<4x1xf32>
    %39 = arith.mulf %37, %38 : vector<4x1xf32>
    %40 = vector.broadcast %39 : vector<4x1xf32> to vector<4x32xf32>
    %41 = arith.subf %35, %40 : vector<4x32xf32>
    %42 = arith.mulf %41, %41 : vector<4x32xf32>
    %cst_12 = arith.constant dense<0.000000e+00> : vector<4xf32>
    %43 = vector.multi_reduction <add>, %42, %cst_12 [1] : vector<4x32xf32> to vector<4xf32>
    %44 = vector.shape_cast %43 : vector<4xf32> to vector<4x1xf32>
    %cst_13 = arith.constant 3.125000e-02 : f32
    %45 = vector.broadcast %cst_13 : f32 to vector<4x1xf32>
    %46 = arith.mulf %44, %45 : vector<4x1xf32>
    %c0_14 = arith.constant 0 : index
    %c0_15 = arith.constant 0 : index
    %47 = vector.load %arg4[%c0_14, %c0_15] : memref<4x1xf32, #tpu.memory_space<vmem>>, vector<4x1xf32>
    %cst_16 = arith.constant 9.99999974E-6 : f32
    %48 = vector.broadcast %cst_16 : f32 to vector<4x1xf32>
    %49 = arith.addf %46, %48 : vector<4x1xf32>
    %50 = math.rsqrt %49 : vector<4x1xf32>
    %51 = arith.mulf %47, %50 : vector<4x1xf32>
    %c0_17 = arith.constant 0 : index
    %c0_18 = arith.constant 0 : index
    %52 = vector.load %arg5[%c0_17, %c0_18] : memref<4x1xf32, #tpu.memory_space<vmem>>, vector<4x1xf32>
    %53 = arith.mulf %39, %51 : vector<4x1xf32>
    %54 = arith.subf %52, %53 : vector<4x1xf32>
    %55 = vector.broadcast %51 : vector<4x1xf32> to vector<4x32xf32>
    %56 = arith.mulf %35, %55 : vector<4x32xf32>
    %57 = vector.broadcast %54 : vector<4x1xf32> to vector<4x32xf32>
    %58 = arith.addf %56, %57 : vector<4x32xf32>
    %cst_19 = arith.constant 0.000000e+00 : f32
    %59 = vector.broadcast %cst_19 : f32 to vector<4x32xf32>
    %60 = arith.maximumf %58, %59 : vector<4x32xf32>
    %c0_20 = arith.constant 0 : index
    %c0_21 = arith.constant 0 : index
    %61 = vector.load %arg2[%c0_20, %c0_21] : memref<8x12xbf16, #tpu.memory_space<vmem>>, vector<8x12xbf16>
    %c1_i32_22 = arith.constant 1 : i32
    %62 = tpu.dynamic_rotate %60 by %c1_i32_22 dim 1 : vector<4x32xf32>, i32 -> vector<4x32xf32>
    %cst_23 = arith.constant 0.000000e+00 : f32
    %63 = vector.shape_cast %18 : vector<1x32xi1> to vector<1x32xi1>
    %64 = vector.broadcast %63 : vector<1x32xi1> to vector<4x32xi1>
    %65 = vector.broadcast %cst_23 : f32 to vector<4x32xf32>
    %66 = arith.select %64, %65, %62 : vector<4x32xi1>, vector<4x32xf32>
    %c31_i32_24 = arith.constant 31 : i32
    %67 = tpu.dynamic_rotate %60 by %c31_i32_24 dim 1 : vector<4x32xf32>, i32 -> vector<4x32xf32>
    %cst_25 = arith.constant 0.000000e+00 : f32
    %68 = vector.shape_cast %20 : vector<1x32xi1> to vector<1x32xi1>
    %69 = vector.broadcast %68 : vector<1x32xi1> to vector<4x32xi1>
    %70 = vector.broadcast %cst_25 : f32 to vector<4x32xf32>
    %71 = arith.select %69, %70, %67 : vector<4x32xi1>, vector<4x32xf32>
    %72 = tpu.concatenate %66, %60, %71 in 0 : vector<4x32xf32>, vector<4x32xf32>, vector<4x32xf32> -> vector<12x32xf32>
    %73 = arith.truncf %72 : vector<12x32xf32> to vector<12x32xbf16>
    %cst_26 = arith.constant dense<0.000000e+00> : vector<8x32xf32>
    %74 = tpu.matmul %61, %73, %cst_26 {dimension_numbers = #tpu.dot_dimension_numbers<[1], [0], [0], [1], [0, 0, 1, 1], [], []>} : vector<8x12xbf16>, vector<12x32xbf16>, vector<8x32xf32> -> vector<8x32xf32>
    %cst_27 = arith.constant dense<0.000000e+00> : vector<8xf32>
    %75 = vector.multi_reduction <add>, %74, %cst_27 [1] : vector<8x32xf32> to vector<8xf32>
    %76 = vector.shape_cast %75 : vector<8xf32> to vector<8x1xf32>
    %cst_28 = arith.constant 3.125000e-02 : f32
    %77 = vector.broadcast %cst_28 : f32 to vector<8x1xf32>
    %78 = arith.mulf %76, %77 : vector<8x1xf32>
    %79 = vector.broadcast %78 : vector<8x1xf32> to vector<8x32xf32>
    %80 = arith.subf %74, %79 : vector<8x32xf32>
    %81 = arith.mulf %80, %80 : vector<8x32xf32>
    %cst_29 = arith.constant dense<0.000000e+00> : vector<8xf32>
    %82 = vector.multi_reduction <add>, %81, %cst_29 [1] : vector<8x32xf32> to vector<8xf32>
    %83 = vector.shape_cast %82 : vector<8xf32> to vector<8x1xf32>
    %cst_30 = arith.constant 3.125000e-02 : f32
    %84 = vector.broadcast %cst_30 : f32 to vector<8x1xf32>
    %85 = arith.mulf %83, %84 : vector<8x1xf32>
    %c0_31 = arith.constant 0 : index
    %c0_32 = arith.constant 0 : index
    %86 = vector.load %arg6[%c0_31, %c0_32] : memref<8x1xf32, #tpu.memory_space<vmem>>, vector<8x1xf32>
    %cst_33 = arith.constant 9.99999974E-6 : f32
    %87 = vector.broadcast %cst_33 : f32 to vector<8x1xf32>
    %88 = arith.addf %85, %87 : vector<8x1xf32>
    %89 = math.rsqrt %88 : vector<8x1xf32>
    %90 = arith.mulf %86, %89 : vector<8x1xf32>
    %c0_34 = arith.constant 0 : index
    %c0_35 = arith.constant 0 : index
    %91 = vector.load %arg7[%c0_34, %c0_35] : memref<8x1xf32, #tpu.memory_space<vmem>>, vector<8x1xf32>
    %92 = arith.mulf %78, %90 : vector<8x1xf32>
    %93 = arith.subf %91, %92 : vector<8x1xf32>
    %c0_36 = arith.constant 0 : index
    %c0_37 = arith.constant 0 : index
    %94 = vector.load %arg3[%c0_36, %c0_37] : memref<8x4xbf16, #tpu.memory_space<vmem>>, vector<8x4xbf16>
    %95 = arith.truncf %21 : vector<4x32xf32> to vector<4x32xbf16>
    %cst_38 = arith.constant dense<0.000000e+00> : vector<8x32xf32>
    %96 = tpu.matmul %94, %95, %cst_38 {dimension_numbers = #tpu.dot_dimension_numbers<[1], [0], [0], [1], [0, 0, 1, 1], [], []>} : vector<8x4xbf16>, vector<4x32xbf16>, vector<8x32xf32> -> vector<8x32xf32>
    %cst_39 = arith.constant dense<0.000000e+00> : vector<8xf32>
    %97 = vector.multi_reduction <add>, %96, %cst_39 [1] : vector<8x32xf32> to vector<8xf32>
    %98 = vector.shape_cast %97 : vector<8xf32> to vector<8x1xf32>
    %cst_40 = arith.constant 3.125000e-02 : f32
    %99 = vector.broadcast %cst_40 : f32 to vector<8x1xf32>
    %100 = arith.mulf %98, %99 : vector<8x1xf32>
    %101 = vector.broadcast %100 : vector<8x1xf32> to vector<8x32xf32>
    %102 = arith.subf %96, %101 : vector<8x32xf32>
    %103 = arith.mulf %102, %102 : vector<8x32xf32>
    %cst_41 = arith.constant dense<0.000000e+00> : vector<8xf32>
    %104 = vector.multi_reduction <add>, %103, %cst_41 [1] : vector<8x32xf32> to vector<8xf32>
    %105 = vector.shape_cast %104 : vector<8xf32> to vector<8x1xf32>
    %cst_42 = arith.constant 3.125000e-02 : f32
    %106 = vector.broadcast %cst_42 : f32 to vector<8x1xf32>
    %107 = arith.mulf %105, %106 : vector<8x1xf32>
    %c0_43 = arith.constant 0 : index
    %c0_44 = arith.constant 0 : index
    %108 = vector.load %arg8[%c0_43, %c0_44] : memref<8x1xf32, #tpu.memory_space<vmem>>, vector<8x1xf32>
    %cst_45 = arith.constant 9.99999974E-6 : f32
    %109 = vector.broadcast %cst_45 : f32 to vector<8x1xf32>
    %110 = arith.addf %107, %109 : vector<8x1xf32>
    %111 = math.rsqrt %110 : vector<8x1xf32>
    %112 = arith.mulf %108, %111 : vector<8x1xf32>
    %c0_46 = arith.constant 0 : index
    %c0_47 = arith.constant 0 : index
    %113 = vector.load %arg9[%c0_46, %c0_47] : memref<8x1xf32, #tpu.memory_space<vmem>>, vector<8x1xf32>
    %114 = arith.mulf %100, %112 : vector<8x1xf32>
    %115 = arith.subf %113, %114 : vector<8x1xf32>
    %116 = vector.broadcast %90 : vector<8x1xf32> to vector<8x32xf32>
    %117 = arith.mulf %74, %116 : vector<8x32xf32>
    %118 = vector.broadcast %93 : vector<8x1xf32> to vector<8x32xf32>
    %119 = arith.addf %117, %118 : vector<8x32xf32>
    %120 = vector.broadcast %112 : vector<8x1xf32> to vector<8x32xf32>
    %121 = arith.mulf %96, %120 : vector<8x32xf32>
    %122 = vector.broadcast %115 : vector<8x1xf32> to vector<8x32xf32>
    %123 = arith.addf %121, %122 : vector<8x32xf32>
    %124 = arith.addf %119, %123 : vector<8x32xf32>
    %cst_48 = arith.constant 0.000000e+00 : f32
    %125 = vector.broadcast %cst_48 : f32 to vector<8x32xf32>
    %126 = arith.maximumf %124, %125 : vector<8x32xf32>
    %c0_49 = arith.constant 0 : index
    %c0_50 = arith.constant 0 : index
    %127 = vector.load %arg10[%c0_49, %c0_50] : memref<8x32xf32, #tpu.memory_space<vmem>>, vector<8x32xf32>
    tpu.vector_store %arg10[%c0_49, %c0_50], %126 {strides = array<i32>} : memref<8x32xf32, #tpu.memory_space<vmem>>, vector<8x32xf32>,
    return
  }
}

</mosaic_0001>

<bundles_post_ra>
// kernel: block_forward.1
= control target key start
LH: loop header
LB: loop body
LE: loop exit
PB: predicated region body
PF: predicated region fallthrough
CT: control target
= control target key end

     0   :  { %s383_s15 = smov 32   ;;  %vm54_vm0 = vcmask 1047808   ;;  %v384_v3 = vmov 0.0   ;;  %vm385_vm1 = vmmov 0   ;;  %s387_s16 = smov 127   ;;  %v36_v6 = vlaneseq  ;;  %s524_s0 = inlined_call_operand.vmem [shape: f32[4,32], index: 0, kind: input, shape index: {}]   ;;  %s525_s1 = inlined_call_operand.vmem [shape: bf16[4,12], index: 1, kind: input, shape index: {}]   ;;  %s526_s3 = inlined_call_operand.vmem [shape: bf16[8,4], index: 3, kind: input, shape index: {}]   ;;  %s527_s4 = inlined_call_operand.vmem [shape: f32[4,1], index: 4, kind: input, shape index: {}]   ;;  %s528_s5 = inlined_call_operand.vmem [shape: f32[4,1], index: 5, kind: input, shape index: {}]   ;;  %s529_s8 = inlined_call_operand.vmem [shape: f32[8,1], index: 8, kind: input, shape index: {}]   ;;  %s530_s2 = inlined_call_operand.vmem [shape: bf16[8,12], index: 2, kind: input, shape index: {}]   ;;  %s531_s6 = inlined_call_operand.vmem [shape: f32[8,1], index: 6, kind: input, shape index: {}]   ;;  %s532_s7 = inlined_call_operand.vmem [shape: f32[8,1], index: 7, kind: input, shape index: {}]   ;;  %s533_s9 = inlined_call_operand.vmem [shape: f32[8,1], index: 9, kind: input, shape index: {}]   ;;  %s534_s10 = inlined_call_operand.vmem [shape: f32[8,32], index: 10, kind: output, shape index: {}]  }
   0x1   :  { %v52_v0 = vld [vmem:[%s524_s0] sm:$0xf]  ;;  %351 = vmatprep.subr.bf16.mxu0 %v384_v3  ;;  %357 = vmatprep.subr.bf16.mxu1 %v384_v3  ;;  %s386_s0 = smov 97   ;;  %vm77_vm4 = vcmask 1043456   ;;  %vm84_vm5 = vcmask 1045504   ;;  %vm80_vm6 = vcmask 97280  }
   0x2   :  { %55 = vrot.lane.b32.xlu0 %v52_v0, %s383_s15  ;;  %353 = vmatprep.mubr.msk.bf16.mxu0 %vm385_vm1, %v384_v3  ;;  %v37_v7 = vand.u32 127, %v36_v6  ;;  %v75_v11 = vrot.slane %v52_v0, 4  ;;  %v53_v19 = vld [vmem:[%s525_s1] sm:$0x3]  ;;  %v245_v20 = vpack.c.bf16 %v52_v0, %v52_v0  ;;  %vm250_vm7 = vcmask 1041408  }
   0x3   :  { %359 = vmatprep.mubr.msk.bf16.mxu1 %vm385_vm1, %v384_v3  ;;  %v244_v22 = vld [vmem:[%s526_s3] sm:$0xf]  ;;  %vm246_vm8 = vcmask 31744   ;;  %vm128_vm9 = vcmask 257024   ;;  %v388_v33 = vmov 0   ;;  %vm226_vm10 = vcmask 261120  }
   0x4   :  { %v42_v8 = vand.u32 15, %v37_v7  ;;  %v252_v21 = vsel %vm250_vm7, %v245_v20, 0  ;;  %375 = vset.pattern.permute.xlu0 %v388_v33  ;;  %376 = vset.pattern.permute.xlu1 %v388_v33  ;;  %v139_v41 = vld [vmem:[%s527_s4] sm:$0xf] }
   0x5   :  { %v143_v44 = vld [vmem:[%s528_s5] sm:$0xf] }
   0x6   :  { %vm455_vm2 = vcmp.eq.s32.totalorder %v42_v8, 0  ;;  %vm461_vm3 = vcmp.eq.s32.totalorder %v42_v8, 15  ;;  %v304_v63 = vld [vmem:[%s529_s8] sm:$0xff] }
   0x7   :  { %v308_v33 = vld [vmem:[%s533_s9] sm:$0xff] }
  0x74   :  { %v56_v1 = vpop.permute.xlu0 %55 }
  0x75   :  { %v57_v2 = vsel %vm54_vm0, %v56_v1, %v52_v0 }
  0x76   :  { %58 = vrot.lane.b32.xlu0 %v57_v2, %s383_s15 }
  0xe8   :  { %v59_v4 = vpop.permute.xlu0 %58 }
  0xe9   :  { %v60_v5 = vsel %vm54_vm0, %v59_v4, %v52_v0 }
  0xea   :  { %64 = vrot.lane.b32.xlu1 %v60_v5, %s386_s0 }
  0xee   :  { %70 = vrot.lane.b32.xlu1 %v60_v5, %s387_s16 }
 0x15c   :  { %v65_v10 = vpop.permute.xlu1 %64 }
 0x15d   :  { %v67_v12 = vsel %vm455_vm2, 0.0, %v65_v10 }
 0x15e   :  { %v78_v16 = vsel %vm77_vm4, %v67_v12, %v75_v11 }
 0x160   :  { %v71_v14 = vpop.permute.xlu1 %70 }
 0x161   :  { %v73_v15 = vsel %vm461_vm3, 0.0, %v71_v14  ;;  %v159_v14 = vld [vmem:[%s530_s2] sm:$0xf] }
 0x162   :  { %v79_v17 = vpack.c.bf16 %v73_v15, %v78_v16 }
 0x164   :  { %v86_v18 = vsel %vm84_vm5, %v79_v17, 0 }
 0x165   :  { %352 = vmatpush3.bf16.msra.mxu0 %v86_v18 }
 0x166   :  { %363 = vmatprep.subr.bf16.mxu0 %v384_v3 }
 0x168   :  { %354 = vmatmul.mubr.msk.bf16.vlgmr.msra.gmra.mrb[0].mxu0 %vm80_vm6, %v53_v19 }
 0x169   :  { %365 = vmatprep.mubr.msk.bf16.mxu0 %vm385_vm1, %v384_v3  ;;  %364 = vmatpush3.bf16.msra.mxu0 %v252_v21 }
 0x170   :  { %366 = vmatmul.mubr.msk.bf16.vlgmr.msra.gmra.mrb[4].mxu0 %vm246_vm8, %v244_v22 }
 0x23b   :  { %v122_v23 = vpop.f32.mrb[0].mxu0 }
 0x23c   :  { %v355_v24 = vpop.f32.mrb[1].mxu0  ;;  %v129_v25 = vsel %vm128_vm9, %v122_v23, 0.0 }
 0x23d   :  { %130 = vadd.xlane.f32.xlu0 %v129_v25  ;;  %v125_v26 = vpop.f32.mrb[2].mxu0 }
 0x23e   :  { %v356_v27 = vpop.f32.mrb[3].mxu0  ;;  %v237_v26 = vld [vmem:[%s531_s6] sm:$0xff] }
 0x243   :  { %v477_v34 = vpop.f32.mrb[4].mxu0 }
 0x244   :  { %v367_v35 = vpop.f32.mrb[5].mxu0  ;;  %v294_v47 = vsel %vm226_vm10, %v477_v34, 0.0 }
 0x245   :  { %v291_v36 = vpop.f32.mrb[6].mxu0 }
 0x246   :  { %v368_v37 = vpop.f32.mrb[7].mxu0 }
 0x2ca   :  { %v131_v28 = vpop.xlane.xlu0 %130 }
 0x2cb   :  { %v132_v29 = vmul.f32 0.03125, %v131_v28 }
 0x2cd   :  { %v133_v30 = vsub.f32 %v122_v23, %v132_v29 }
 0x2cf   :  { %v134_v31 = vmul.f32 %v133_v30, %v133_v30 }
 0x2d1   :  { %v135_v32 = vsel %vm128_vm9, %v134_v31, 0.0 }
 0x2d2   :  { %136 = vadd.xlane.f32.xlu1 %v135_v32 }
 0x35f   :  { %v137_v38 = vpop.xlane.xlu1 %136 }
 0x360   :  { %v138_v39 = vmul.f32 0.03125, %v137_v38 }
 0x362   :  { %v140_v40 = vadd.f32 1e-05, %v138_v39 }
 0x364   :  { %377 = vrsqrt.f32 %v140_v40 }
 0x36e   :  { %v378_v42 = vpop.eup %377 }
 0x36f   :  { %v142_v43 = vmul.f32 %v378_v42, %v139_v41 }
 0x371   :  { %148 = vperm.xlu0 %375, %v142_v43   ;;  %v144_v45 = vmul.f32 %v142_v43, %v132_v29  ;;  %v241_v29 = vld [vmem:[%s532_s7] sm:$0xff] }
 0x373   :  { %v145_v46 = vsub.f32 %v143_v44, %v144_v45 }
 0x375   :  { %154 = vperm.xlu1 %376, %v145_v46  }
 0x390   :  { %295 = vadd.xlane.f32.xlu0 %v294_v47 }
 0x3f0   :  { %v149_v48 = vpop.permute.xlu0 %148 }
 0x3f1   :  { %v151_v49 = vmul.f32 %v149_v48, %v122_v23 }
 0x3f4   :  { %v155_v50 = vpop.permute.xlu1 %154 }
 0x3f5   :  { %v157_v51 = vadd.f32 %v155_v50, %v151_v49 }
 0x3f7   :  { %v158_v52 = vmax.f32 %v157_v51, 0.0 }
 0x3f9   :  { %160 = vrot.lane.b32.xlu1 %v158_v52, %s383_s15  ;;  %v176_v6 = vrot.slane %v158_v52, 4 }
 0x41d   :  { %v296_v53 = vpop.xlane.xlu0 %295 }
 0x41e   :  { %v297_v54 = vmul.f32 0.03125, %v296_v53 }
 0x420   :  { %v298_v55 = vsub.f32 %v477_v34, %v297_v54 }
 0x422   :  { %v299_v56 = vmul.f32 %v298_v55, %v298_v55 }
 0x424   :  { %v300_v57 = vsel %vm226_vm10, %v299_v56, 0.0 }
 0x425   :  { %301 = vadd.xlane.f32.xlu0 %v300_v57 }
 0x46b   :  { %v161_v58 = vpop.permute.xlu1 %160 }
 0x46c   :  { %v162_v59 = vsel %vm54_vm0, %v161_v58, %v158_v52 }
 0x46d   :  { %163 = vrot.lane.b32.xlu1 %v162_v59, %s383_s15 }
 0x4b2   :  { %v302_v60 = vpop.xlane.xlu0 %301 }
 0x4b3   :  { %v303_v61 = vmul.f32 0.03125, %v302_v60 }
 0x4b5   :  { %v305_v62 = vadd.f32 1e-05, %v303_v61 }
 0x4b7   :  { %379 = vrsqrt.f32 %v305_v62 }
 0x4c1   :  { %v380_v0 = vpop.eup %379 }
 0x4c2   :  { %v307_v1 = vmul.f32 %v380_v0, %v304_v63 }
 0x4c4   :  { %325 = vperm.xlu0 %375, %v307_v1   ;;  %v309_v32 = vmul.f32 %v307_v1, %v297_v54 }
 0x4c6   :  { %v310_v35 = vsub.f32 %v308_v33, %v309_v32 }
 0x4df   :  { %v164_v2 = vpop.permute.xlu1 %163 }
 0x4e0   :  { %v165_v3 = vsel %vm54_vm0, %v164_v2, %v158_v52 }
 0x4e1   :  { %167 = vrot.lane.b32.xlu1 %v165_v3, %s386_s0 }
 0x4e5   :  { %171 = vrot.lane.b32.xlu1 %v165_v3, %s387_s16 }
 0x543   :  { %v326_v37 = vpop.permute.xlu0 %325 }
 0x544   :  { %v328_v39 = vmul.f32 %v326_v37, %v477_v34 }
 0x553   :  { %v168_v4 = vpop.permute.xlu1 %167 }
 0x554   :  { %v170_v5 = vsel %vm455_vm2, 0.0, %v168_v4 }
 0x555   :  { %v178_v10 = vsel %vm77_vm4, %v170_v5, %v176_v6 }
 0x557   :  { %v172_v7 = vpop.permute.xlu1 %171 }
 0x558   :  { %v174_v8 = vsel %vm461_vm3, 0.0, %v172_v7 }
 0x559   :  { %v179_v11 = vpack.c.bf16 %v174_v8, %v178_v10 }
 0x55b   :  { %v184_v12 = vsel %vm84_vm5, %v179_v11, 0 }
 0x55c   :  { %358 = vmatpush3.bf16.msra.mxu1 %v184_v12 }
 0x55f   :  { %360 = vmatmul.mubr.msk.bf16.vlgmr.msra.gmra.mrb[0].mxu1 %vm80_vm6, %v159_v14 }
 0x632   :  { %v220_v15 = vpop.f32.mrb[0].mxu1 }
 0x633   :  { %v361_v9 = vpop.f32.mrb[1].mxu1  ;;  %v227_v16 = vsel %vm226_vm10, %v220_v15, 0.0 }
 0x634   :  { %228 = vadd.xlane.f32.xlu1 %v227_v16  ;;  %v223_v17 = vpop.f32.mrb[2].mxu1 }
 0x635   :  { %v362_v13 = vpop.f32.mrb[3].mxu1 }
 0x6c1   :  { %v229_v18 = vpop.xlane.xlu1 %228 }
 0x6c2   :  { %v230_v19 = vmul.f32 0.03125, %v229_v18 }
 0x6c4   :  { %v231_v20 = vsub.f32 %v220_v15, %v230_v19 }
 0x6c6   :  { %v232_v21 = vmul.f32 %v231_v20, %v231_v20 }
 0x6c8   :  { %v233_v22 = vsel %vm226_vm10, %v232_v21, 0.0 }
 0x6c9   :  { %234 = vadd.xlane.f32.xlu1 %v233_v22 }
 0x756   :  { %v235_v23 = vpop.xlane.xlu1 %234 }
 0x757   :  { %v236_v24 = vmul.f32 0.03125, %v235_v23 }
 0x759   :  { %v238_v25 = vadd.f32 1e-05, %v236_v24 }
 0x75b   :  { %381 = vrsqrt.f32 %v238_v25 }
 0x765   :  { %v382_v27 = vpop.eup %381 }
 0x766   :  { %v240_v28 = vmul.f32 %v382_v27, %v237_v26 }
 0x768   :  { %313 = vperm.xlu1 %376, %v240_v28   ;;  %v242_v30 = vmul.f32 %v240_v28, %v230_v19 }
 0x76a   :  { %v243_v31 = vsub.f32 %v241_v29, %v242_v30 }
 0x76c   :  { %319 = vperm.xlu1 %376, %v243_v31  }
 0x770   :  { %331 = vperm.xlu1 %376, %v310_v35  }
 0x7e7   :  { %v314_v36 = vpop.permute.xlu1 %313 }
 0x7e8   :  { %v316_v40 = vmul.f32 %v314_v36, %v220_v15 }
 0x7eb   :  { %v320_v38 = vpop.permute.xlu1 %319 }
 0x7ec   :  { %v322_v42 = vadd.f32 %v320_v38, %v316_v40 }
 0x7ef   :  { %v332_v41 = vpop.permute.xlu1 %331 }
 0x7f0   :  { %v334_v43 = vadd.f32 %v332_v41, %v328_v39 }
 0x7f2   :  { %v335_v44 = vadd.f32 %v334_v43, %v322_v42 }
 0x7f4   :  { %v336_v45 = vmax.f32 %v335_v44, 0.0 }
 0x7f6   :  { %337 = vst.msk [vmem:[%s534_s10] sm:$0xff] %vm226_vm10, %v336_v45 }

</bundles_post_ra>
